<compile_context>
chip_gen: v5e
topology: v5e:2x2
jax: 0.10.0
libtpu: 0.0.40
codegen_flags: <defaults>
</compile_context>

<pallas_src>
import functools

import numpy as np
import jax
import jax.numpy as jnp
from jax import lax
from jax.experimental import pallas as pl
from jax.experimental.pallas import tpu as pltpu


# Causal 3x3 PixelCNN taps as (dh, dw) offsets of the read pixel relative to the output
# pixel.  Mask "A" = the 4 strictly-causal off-centre taps; mask "B" additionally uses
# the centre tap (0, 0) (handled separately: no roll, no mask).
_OFF_TAPS = ((-1, -1), (-1, 0), (-1, 1), (0, -1))


def _softplus(v):
    # numerically stable softplus (matches torch.nn.Softplus, beta=1)
    return jnp.maximum(v, 0.0) + jnp.log1p(jnp.exp(-jnp.abs(v)))


def _tap_masks(H, W):
    """(len(_OFF_TAPS), H*W) f32 masks zeroing output pixels whose tap falls off-image."""
    idx = np.arange(H * W)
    hh, ww = idx // W, idx % W
    rows = []
    for dh, dw in _OFF_TAPS:
        ok = np.ones(H * W, bool)
        if dh < 0:
            ok &= hh >= -dh
        if dh > 0:
            ok &= hh <= H - 1 - dh
        if dw < 0:
            ok &= ww >= -dw
        if dw > 0:
            ok &= ww <= W - 1 - dw
        rows.append(ok)
    return np.stack(rows).astype(np.float32)


@functools.cache
def _roll_is_jnp_convention():
    """Probe pltpu.roll's direction once (guards against any convention ambiguity)."""
    def probe(x_ref, o_ref):
        o_ref[...] = pltpu.roll(x_ref[...], 1, axis=1)

    with jax.ensure_compile_time_eval():
        x = jnp.tile(jnp.arange(128, dtype=jnp.float32)[None, :], (8, 1))
        out = pl.pallas_call(
            probe, out_shape=jax.ShapeDtypeStruct((8, 128), jnp.float32))(x)
        # jnp.roll convention: out[i] = x[i - shift]  =>  out[0, 1] == 0
        return bool(out[0, 1] < 0.5)


# --------------------------------------------------------------------------------------
# Fused Pallas kernel
# --------------------------------------------------------------------------------------

def make_fused_conditioner(N, C, H, W, F, E, num_blocks):
    HW, CE = H * W, C * E
    OUT_ROWS = 3 * CE + 2 * C          # 3 embedded heads + 2 pass-through chunks
    n_taps = len(_OFF_TAPS)
    jnp_conv = _roll_is_jnp_convention()

    def _shift_amount(dh, dw):
        # static lane-roll amount realising shifted[i] = x[i + dh*W + dw] (wrap masked).
        s = dh * W + dw
        return (-s if jnp_conv else s) % HW

    def kernel(x_ref, ns_ref, nb_ref, m_ref,
               win_ref, bin_ref, wblk_ref, bblk_ref,
               wfin_ref, bfin_ref, slab_ref):
        masks = m_ref[...]                                              # (n_taps, HW)

        def shifted(a, t):
            dh, dw = _OFF_TAPS[t]
            return pltpu.roll(a, _shift_amount(dh, dw), axis=1) * masks[t:t + 1, :]

        # ---- PointwiseActNorm: per-(c,h,w) affine, lane-dense (C, HW)
        x = x_ref[0] * ns_ref[...] + nb_ref[...]

        # ---- masked conv type A (C -> F) + ReLU: per-tap MXU accumulate (K = C)
        acc = jnp.dot(win_ref[0], shifted(x, 0), preferred_element_type=jnp.float32)
        for t in range(1, n_taps):
            acc += jnp.dot(win_ref[t], shifted(x, t),
                           preferred_element_type=jnp.float32)
        y = jnp.maximum(acc + bin_ref[...], 0.0)                        # (F, HW)

        # ---- residual masked-B blocks: 5 taps fused into one K=5F matmul per block,
        # per-block actnorm already folded into wblk/bblk in the wrapper.
        for i in range(num_blocks):
            patch = jnp.concatenate(
                [shifted(y, t) for t in range(n_taps)] + [y], axis=0)   # (5F, HW)
            h = jnp.dot(wblk_ref[i], patch, preferred_element_type=jnp.float32)
            y = y + jnp.maximum(h + bblk_ref[i], 0.0)

        # ---- fused [ReLU -> 1x1 out conv -> 3x Linear(1->E) heads + pass-through]
        # as ONE matmul, stored as a single lane-dense (OUT_ROWS, HW) slab.
        res = jnp.dot(wfin_ref[...], jnp.maximum(y, 0.0),
                      preferred_element_type=jnp.float32) + bfin_ref[...]
        slab_ref[0, 0:CE, :] = _softplus(res[0:CE, :])                  # head 0 only
        slab_ref[0, CE:OUT_ROWS, :] = res[CE:OUT_ROWS, :]

    grid_spec = pltpu.PrefetchScalarGridSpec(
        num_scalar_prefetch=0,
        grid=(N,),
        in_specs=[
            pl.BlockSpec((1, C, HW), lambda n: (n, 0, 0)),              # x (N, C, H*W)
            pl.BlockSpec((C, HW), lambda n: (0, 0)),                    # actnorm scale
            pl.BlockSpec((C, HW), lambda n: (0, 0)),                    # actnorm bias
            pl.BlockSpec((n_taps, HW), lambda n: (0, 0)),               # boundary masks
            pl.BlockSpec((n_taps, F, C), lambda n: (0, 0, 0)),          # conv_in taps
            pl.BlockSpec((F, 1), lambda n: (0, 0)),                     # conv_in bias
            pl.BlockSpec((num_blocks, F, (n_taps + 1) * F),
                         lambda n: (0, 0, 0)),                          # fused block W
            pl.BlockSpec((num_blocks, F, 1), lambda n: (0, 0, 0)),      # fused block b
            pl.BlockSpec((OUT_ROWS, F), lambda n: (0, 0)),              # fused out/head W
            pl.BlockSpec((OUT_ROWS, 1), lambda n: (0, 0)),              # fused out/head b
        ],
        out_specs=pl.BlockSpec((1, OUT_ROWS, HW), lambda n: (n, 0, 0)),
    )

    return pl.pallas_call(
        kernel,
        grid_spec=grid_spec,
        out_shape=jax.ShapeDtypeStruct((N, OUT_ROWS, HW), jnp.float32),
        compiler_params=pltpu.CompilerParams(dimension_semantics=("parallel",)),
    )


# --------------------------------------------------------------------------------------
# Parameter setup (deterministic, synthetic)
# --------------------------------------------------------------------------------------

def _spatial_mask(k, mask_type):
    m = np.ones((k, k), np.float32)
    c = k // 2
    m[c, c + (1 if mask_type == "B" else 0):] = 0.0
    m[c + 1:, :] = 0.0
    return jnp.asarray(m)


def init_params(key, c, h, w, embed_dim, num_fmaps, num_blocks, ksize=3):
    keys = iter(jax.random.split(key, 40))
    nrm = lambda shape, s: s * jax.random.normal(next(keys), shape, jnp.float32)
    p = {}
    # PointwiseActNorm(c, h, w): per-element scale/bias in (c, h, w) layout.
    p["norm_scale"] = 1.0 + nrm((c, h, w), 0.05)
    p["norm_bias"] = nrm((c, h, w), 0.05)
    # PixelCNN(c -> 5c, num_fmaps, num_blocks); weights stored pre-masked (HWIO).
    mask_a = _spatial_mask(ksize, "A")[:, :, None, None]
    mask_b = _spatial_mask(ksize, "B")[:, :, None, None]
    p["conv_in_w"] = nrm((ksize, ksize, c, num_fmaps), 0.1) * mask_a
    p["conv_in_b"] = nrm((num_fmaps,), 0.01)
    p["blocks"] = []
    for _ in range(num_blocks):
        p["blocks"].append({
            "w": nrm((ksize, ksize, num_fmaps, num_fmaps), 0.1) * mask_b,
            "b": nrm((num_fmaps,), 0.01),
            "an_scale": 1.0 + nrm((num_fmaps,), 0.05),
            "an_bias": jnp.zeros((num_fmaps,), jnp.float32),
        })
    p["conv_out_w"] = nrm((1, 1, num_fmaps, 5 * c), 0.1)
    p["conv_out_b"] = nrm((5 * c,), 0.01)
    # Linear(1 -> embed_dim) heads
    p["in_w_w"], p["in_w_b"] = nrm((embed_dim,), 0.5), nrm((embed_dim,), 0.1)
    p["ib_w"], p["ib_b"] = nrm((embed_dim,), 0.5), nrm((embed_dim,), 0.1)
    p["op_w"], p["op_b"] = nrm((embed_dim,), 0.5), nrm((embed_dim,), 0.1)
    return p


# --------------------------------------------------------------------------------------
# Forward glue (weight folding in the wrapper is exact linear algebra)
# --------------------------------------------------------------------------------------

def pixelcnn_conditioner_forward(x_nchw, params, num_fmaps, embed_dim, num_blocks):
    N, C, H, W = x_nchw.shape
    F, E = num_fmaps, embed_dim
    HW, CE = H * W, C * E
    OUT_ROWS = 3 * CE + 2 * C
    call = make_fused_conditioner(N, C, H, W, F, E, num_blocks)

    # ---- lane-dense repack: channels on sublanes, flattened H*W on lanes
    x = x_nchw.reshape(N, C, HW).astype(jnp.float32)
    ns = params["norm_scale"].reshape(C, HW)
    nb = params["norm_bias"].reshape(C, HW)
    masks = jnp.asarray(_tap_masks(H, W))

    # conv_in: gather only the statically non-zero mask-A taps, transposed to (F, C).
    w_in = jnp.stack([params["conv_in_w"][dh + 1, dw + 1].T for dh, dw in _OFF_TAPS], 0)
    b_in = params["conv_in_b"].reshape(F, 1)

    # residual blocks: fuse the 5 mask-B taps into one (F, 5F) matrix per block and fold
    # the per-channel actnorm (scale/bias) into the conv weights/bias (exact).
    w_blk, b_blk = [], []
    for blk in params["blocks"]:
        cat = jnp.concatenate([blk["w"][dh + 1, dw + 1] for dh, dw in _OFF_TAPS]
                              + [blk["w"][1, 1]], axis=0)               # (5F, F)
        w_blk.append(cat.T * blk["an_scale"][:, None])                  # (F, 5F)
        b_blk.append((blk["b"] * blk["an_scale"] + blk["an_bias"]).reshape(F, 1))
    w_blk = jnp.stack(w_blk, 0)
    b_blk = jnp.stack(b_blk, 0)

    # fold [1x1 out conv] + [3 block-diagonal Linear(1->E) heads] + [identity pass-through
    # of the out_proj_bias / residual_weight chunks] into ONE (OUT_ROWS, F) matmul.
    heads = (("in_w_w", "in_w_b"), ("ib_w", "ib_b"), ("op_w", "op_b"))
    W2 = jnp.zeros((OUT_ROWS, 5 * C), jnp.float32)
    b2 = []
    for g, (wn, bn) in enumerate(heads):
        blk = jnp.kron(jnp.eye(C, dtype=jnp.float32), params[wn].reshape(E, 1))  # (CE, C)
        W2 = W2.at[g * CE:(g + 1) * CE, g * C:(g + 1) * C].set(blk)
        b2.append(jnp.tile(params[bn], C))
    W2 = W2.at[3 * CE:, 3 * C:].set(jnp.eye(2 * C, dtype=jnp.float32))
    b2 = jnp.concatenate(b2 + [jnp.zeros((2 * C,), jnp.float32)])

    wout = params["conv_out_w"].reshape(F, 5 * C)
    w_fin = W2 @ wout.T                                                 # (OUT_ROWS, F)
    b_fin = (W2 @ params["conv_out_b"] + b2).reshape(OUT_ROWS, 1)

    slab = call(x, ns, nb, masks, w_in, b_in, w_blk, b_blk, w_fin, b_fin)

    # ---- lane-dense slab -> PyTorch output layouts (tiny relayouts, fused by XLA)
    def head(g):  # rows g*CE + c*E + e, lanes h*W + w
        return (slab[:, g * CE:(g + 1) * CE, :]
                .reshape(N, C, E, H, W).transpose(0, 1, 3, 4, 2))

    in_proj_weight, in_proj_bias, out_proj_weight = head(0), head(1), head(2)
    out_proj_bias = slab[:, 3 * CE:3 * CE + C, :].reshape(N, C, H, W)
    residual_weight = slab[:, 3 * CE + C:, :].reshape(N, C, H, W)
    return (in_proj_weight, in_proj_bias, out_proj_weight, out_proj_bias, residual_weight)


# --------------------------------------------------------------------------------------
# Pure-JAX reference (raw, unfolded parameters) for in-script validation
# --------------------------------------------------------------------------------------

def reference_forward(x_nchw, params, num_fmaps, embed_dim, num_blocks):
    def conv(x, w, b):  # x: NCHW, w: HWIO (pre-masked)
        y = lax.conv_general_dilated(
            x, w, window_strides=(1, 1), padding="SAME",
            dimension_numbers=("NCHW", "HWIO", "NCHW"),
            precision=lax.Precision.HIGHEST)
        return y + b[None, :, None, None]

    xn = x_nchw * params["norm_scale"][None] + params["norm_bias"][None]
    y = jax.nn.relu(conv(xn, params["conv_in_w"], params["conv_in_b"]))
    for blk in params["blocks"]:
        h = conv(y, blk["w"], blk["b"])
        y = y + jax.nn.relu(h * blk["an_scale"][None, :, None, None]
                            + blk["an_bias"][None, :, None, None])
    y = jax.nn.relu(y)
    out = conv(y, params["conv_out_w"], params["conv_out_b"])
    chunks = jnp.split(out, 5, axis=1)

    def head(v, wn, bn):
        return v[..., None] * params[wn] + params[bn]

    ipw = jax.nn.softplus(head(chunks[0], "in_w_w", "in_w_b"))
    ipb = head(chunks[1], "ib_w", "ib_b")
    opw = head(chunks[2], "op_w", "op_b")
    return (ipw, ipb, opw, chunks[3], chunks[4])


# --------------------------------------------------------------------------------------

if __name__ == "__main__":
    N, C, H, W = 2, 4, 16, 16
    EMBED_DIM, NUM_FMAPS, NUM_BLOCKS = 32, 16, 4

    _roll_is_jnp_convention()   # warm the (cached) roll-direction probe outside jit

    key = jax.random.PRNGKey(0)
    kx, kp = jax.random.split(key)
    x = jax.random.normal(kx, (N, C, H, W), jnp.float32)
    params = init_params(kp, C, H, W, EMBED_DIM, NUM_FMAPS, NUM_BLOCKS)

    fwd = jax.jit(lambda xx: pixelcnn_conditioner_forward(
        xx, params, NUM_FMAPS, EMBED_DIM, NUM_BLOCKS))
    outs = jax.block_until_ready(fwd(x))

    # shapes must match the PyTorch module's outputs
    assert outs[0].shape == (N, C, H, W, EMBED_DIM)
    assert outs[1].shape == (N, C, H, W, EMBED_DIM)
    assert outs[2].shape == (N, C, H, W, EMBED_DIM)
    assert outs[3].shape == (N, C, H, W)
    assert outs[4].shape == (N, C, H, W)
    assert all(bool(jnp.all(jnp.isfinite(o))) for o in outs)

    # numerical check vs. the pure-JAX reference of the same architecture
    refs = jax.block_until_ready(jax.jit(lambda xx: reference_forward(
        xx, params, NUM_FMAPS, EMBED_DIM, NUM_BLOCKS))(x))
    for o, r in zip(outs, refs):
        np.testing.assert_allclose(np.asarray(o), np.asarray(r), rtol=2e-2, atol=2e-2)

    print("KERNEL_OK")
</pallas_src>

<mosaic_0001>
module attributes {stable_mosaic.version = 11 : i64} {
  func.func @probe(%arg0: memref<8x128xf32, #tpu.memory_space<vmem>>, %arg1: memref<8x128xf32, #tpu.memory_space<vmem>>) attributes {dimension_semantics = [], scalar_prefetch = 0 : i64, scratch_operands = 0 : i64, tpu.core_type = #tpu.core_type<tc>} {
    %c0 = arith.constant 0 : index
    %c0_0 = arith.constant 0 : index
    %0 = vector.load %arg0[%c0, %c0_0] : memref<8x128xf32, #tpu.memory_space<vmem>>, vector<8x128xf32>
    %c1_i32 = arith.constant 1 : i32
    %1 = tpu.dynamic_rotate %0 by %c1_i32 dim 1 : vector<8x128xf32>, i32 -> vector<8x128xf32>
    %c0_1 = arith.constant 0 : index
    %c0_2 = arith.constant 0 : index
    %2 = vector.load %arg1[%c0_1, %c0_2] : memref<8x128xf32, #tpu.memory_space<vmem>>, vector<8x128xf32>
    tpu.vector_store %arg1[%c0_1, %c0_2], %1 {strides = array<i32>} : memref<8x128xf32, #tpu.memory_space<vmem>>, vector<8x128xf32>,
    return
  }
}

</mosaic_0001>

<bundles_post_ra>
// kernel: tpu_custom_call.1
= control target key start
LH: loop header
LB: loop body
LE: loop exit
PB: predicated region body
PF: predicated region fallthrough
CT: control target
= control target key end

     0   :  { %6 = vsyncpa [#allocation3], 0  ;;  %s118_s0 = inlined_call_operand.hbm [shape: f32[8,128], index: 0, kind: input, shape index: {}]   ;;  %s119_s1 = inlined_call_operand.hbm [shape: f32[8,128], index: 1, kind: output, shape index: {}]  }
   0x1   :  { %7 = vsyncpa [#allocation4], 0  ;;  %s13_s8 = sshll.u32 %s118_s0, 4  ;;  %s99_s9 = smov [#allocation2]   ;;  %s14_s8 = int_to_ptr.hbm [resolvable:$true] %s13_s8 }
   0x2   :  { %s15_s10 = sshll.u32 %s99_s9, 4  ;;  %s16_s10 = int_to_ptr.vmem [resolvable:$true] %s15_s10 }
   0x3   :  { %18 = dma.hbm_to_vmem [thread:$0]  %s14_s8, 128, %s16_s10, [#allocation3]  }
   0x4   :  { %95 = dma.done.wait [#allocation3], 128  }
   0x5   :  { %96 = vsyncadd [#allocation3], 4294967168  ;;  %v23_v0 = vld [vmem:[#allocation2] sm:$0xff]  ;;  %s100_s11 = smov 1   ;;  %s101_s12 = smov [#allocation5]  }
   0x6   :  { %24 = vrot.lane.b32.xlu0 %v23_v0, %s100_s11  ;;  %s32_s13 = sshll.u32 %s101_s12, 4  ;;  %s34_s16 = sshll.u32 %s119_s1, 4  ;;  %s33_s13 = int_to_ptr.vmem [resolvable:$true] %s32_s13  ;;  %s35_s16 = int_to_ptr.hbm [resolvable:$true] %s34_s16 }
  0x78   :  { %v25_v1 = vpop.permute.xlu0 %24 }
  0x79   :  { %26 = vst [vmem:[#allocation5] sm:$0xff] %v25_v1 }
  0x7a   :  { %37 = dma.vmem_to_hbm [thread:$0]  %s33_s13, 128, %s35_s16, [#allocation4]  }
  0x7b   :  { %97 = dma.done.wait [#allocation4], 128  }
  0x7c   :  { %98 = vsyncadd [#allocation4], 4294967168 }
  0x7d   :  { %42 = vsyncpa [#allocation3], 1 }
  0x7e   :  { %43 = vsyncpa [#allocation4], 1 }

</bundles_post_ra>
